<compile_context>
chip_gen: v6e
topology: v6e:2x2x1
jax: 0.10.0
libtpu: 0.0.40
codegen_flags: <defaults>
</compile_context>

<pallas_src>
import jax
import jax.numpy as jnp
from jax.experimental import pallas as pl
from jax.experimental.pallas import tpu as pltpu

_N_PAD = 128  # lane-dense padded width for the MXU weight operand (real N is 2)


def _round_up(x, m):
    return ((x + m - 1) // m) * m


def _physical_vmem_bytes():
    try:
        info = pltpu.get_tpu_info()
        v = getattr(info, "vmem_capacity_bytes", None)
        if v:
            return int(v)
    except Exception:
        pass
    return 64 << 20  # conservative default (v7x per-TC VMEM)


def _choose_tile_b(B, H, itemsize, block_b, phys_vmem):
    """Pick the batch tile: as large as VMEM allows, multiple of the dtype's
    min sublane tile, but small enough that the grid has >= 2 steps (v7x)."""
    sublane = max(8, 32 // itemsize)  # f32: 8, bf16: 16, int8/fp8: 32
    if B <= sublane:
        return B  # single block equal to the full batch dim (always legal)

    # Budget for the double-buffered (x, out) tiles; W^T/bias residency reserved.
    budget = min(phys_vmem // 2, 64 << 20)
    resident = 2 * (H + 1) * _N_PAD * itemsize          # padded W^T + bias
    per_row = 2 * (H + _N_PAD) * itemsize               # x + lane-padded out, 2 bufs
    max_tb = max(sublane, ((budget - resident) // per_row) // sublane * sublane)

    tb = min(block_b, max_tb)
    # Largest tile that still yields >= 2 grid steps (lets v7x use both TCs).
    tb = min(tb, _round_up(pl.cdiv(B, 2), sublane))
    # Never larger than the (rounded-up) batch.
    tb = min(tb, _round_up(B, sublane))
    return max(sublane, tb)


def _nsp_head_kernel(x_ref, w_ref, b_ref, o_ref):
    # x_ref: (tb, H)  w_ref: (H, 128)  b_ref: (1, 2) f32  o_ref: (tb, 2)
    acc = jnp.dot(x_ref[...], w_ref[...], preferred_element_type=jnp.float32)
    n_out = o_ref.shape[-1]
    o_ref[...] = (acc[:, :n_out] + b_ref[...]).astype(o_ref.dtype)


def bert_only_nsp_head(pooled_output, weight, bias, *, block_b=4096,
                       compute_dtype=None):
    """pooled_output: (B, H); weight: (2, H); bias: (2,) -> (B, 2)."""
    B, H = pooled_output.shape
    n_out = weight.shape[0]  # 2
    out_dtype = pooled_output.dtype
    cdtype = jnp.dtype(compute_dtype) if compute_dtype is not None else jnp.dtype(out_dtype)
    itemsize = cdtype.itemsize

    x = pooled_output.astype(cdtype)

    # Parameters: pre-transpose and lane-pad W to 128 (lane-dense MXU operand);
    # bias pre-cast to f32 so the kernel hot loop is dot + add + store.
    w_t = jnp.zeros((H, _N_PAD), dtype=cdtype).at[:, :n_out].set(weight.T.astype(cdtype))
    b2d = bias.astype(jnp.float32).reshape(1, n_out)

    phys_vmem = _physical_vmem_bytes()
    tb = _choose_tile_b(B, H, itemsize, block_b, phys_vmem)
    grid = (pl.cdiv(B, tb),)  # ragged last block handled by Pallas masking

    # VMEM actually needed: double-buffered x & (lane-padded) out tiles + W^T, bias.
    vmem_needed = 2 * tb * (H + _N_PAD) * itemsize + 2 * (H + 1) * _N_PAD * itemsize
    vmem_limit = int(min(max(vmem_needed + (4 << 20), 32 << 20),
                         int(phys_vmem * 0.75)))
    vmem_limit = max(vmem_limit, vmem_needed + (1 << 20))

    out = pl.pallas_call(
        _nsp_head_kernel,
        out_shape=jax.ShapeDtypeStruct((B, n_out), out_dtype),
        grid_spec=pltpu.PrefetchScalarGridSpec(
            num_scalar_prefetch=0,
            grid=grid,
            in_specs=[
                pl.BlockSpec((tb, H), lambda i: (i, 0)),        # x: pipelined over batch
                pl.BlockSpec((H, _N_PAD), lambda i: (0, 0)),    # W^T: resident
                pl.BlockSpec((1, n_out), lambda i: (0, 0)),     # bias: resident (f32)
            ],
            out_specs=pl.BlockSpec((tb, n_out), lambda i: (i, 0)),
        ),
        compiler_params=pltpu.CompilerParams(
            dimension_semantics=("parallel",),  # shard batch tiles over v7x's 2 TCs
            vmem_limit_bytes=vmem_limit,
        ),
    )(x, w_t, b2d)

    return out


if __name__ == "__main__":
    batch, hidden = 2, 32

    key = jax.random.PRNGKey(0)
    kx, kw, kb = jax.random.split(key, 3)

    # Deterministic synthetic parameters (nn.Linear(hidden, 2): W (2, hidden), b (2,))
    pooled_output = jax.random.normal(kx, (batch, hidden), dtype=jnp.float32)
    weight = jax.random.normal(kw, (2, hidden), dtype=jnp.float32) * 0.02
    bias = jax.random.normal(kb, (2,), dtype=jnp.float32) * 0.02

    out = bert_only_nsp_head(pooled_output, weight, bias)
    out = jax.block_until_ready(out)

    # Pure-JAX reference check
    ref = pooled_output @ weight.T + bias
    assert out.shape == (batch, 2)
    assert jnp.allclose(out, ref, atol=1e-5, rtol=1e-5)

    print("KERNEL_OK")
</pallas_src>

<mosaic_0001>
module attributes {stable_mosaic.version = 11 : i64} {
  func.func @_nsp_head_kernel(%arg0: i32, %arg1: memref<2x32xf32, #tpu.memory_space<vmem>>, %arg2: memref<32x128xf32, #tpu.memory_space<vmem>>, %arg3: memref<1x2xf32, #tpu.memory_space<vmem>>, %arg4: memref<2x2xf32, #tpu.memory_space<vmem>>) attributes {dimension_semantics = [#tpu.dimension_semantics<parallel>], iteration_bounds = array<i64: 1>, scalar_prefetch = 0 : i64, scratch_operands = 0 : i64, tpu.core_type = #tpu.core_type<tc>, window_params = [{transform_indices = @transform_0, window_bounds = array<i64: 2, 32>}, {pipeline_mode = #tpu.pipeline_mode<synchronous>, transform_indices = @transform_1, window_bounds = array<i64: 32, 128>}, {pipeline_mode = #tpu.pipeline_mode<synchronous>, transform_indices = @transform_2, window_bounds = array<i64: 1, 2>}, {transform_indices = @transform_3, window_bounds = array<i64: 2, 2>}]} {
    %c0 = arith.constant 0 : index
    %c0_0 = arith.constant 0 : index
    %0 = vector.load %arg1[%c0, %c0_0] : memref<2x32xf32, #tpu.memory_space<vmem>>, vector<2x32xf32>
    %c0_1 = arith.constant 0 : index
    %c0_2 = arith.constant 0 : index
    %1 = vector.load %arg2[%c0_1, %c0_2] : memref<32x128xf32, #tpu.memory_space<vmem>>, vector<32x128xf32>
    %cst = arith.constant dense<0.000000e+00> : vector<2x128xf32>
    %2 = tpu.matmul %0, %1, %cst {dimension_numbers = #tpu.dot_dimension_numbers<[1], [0], [0], [1], [0, 0, 1, 1], [], []>} : vector<2x32xf32>, vector<32x128xf32>, vector<2x128xf32> -> vector<2x128xf32>
    %3 = vector.extract_strided_slice %2 {offsets = [0, 0], sizes = [2, 2], strides = [1, 1]} : vector<2x128xf32> to vector<2x2xf32>
    %c0_3 = arith.constant 0 : index
    %c0_4 = arith.constant 0 : index
    %4 = vector.load %arg3[%c0_3, %c0_4] : memref<1x2xf32, #tpu.memory_space<vmem>>, vector<1x2xf32>
    %5 = vector.broadcast %4 : vector<1x2xf32> to vector<2x2xf32>
    %6 = arith.addf %3, %5 : vector<2x2xf32>
    %c0_5 = arith.constant 0 : index
    %c0_6 = arith.constant 0 : index
    %7 = vector.load %arg4[%c0_5, %c0_6] : memref<2x2xf32, #tpu.memory_space<vmem>>, vector<2x2xf32>
    tpu.vector_store %arg4[%c0_5, %c0_6], %6 {strides = array<i32>} : memref<2x2xf32, #tpu.memory_space<vmem>>, vector<2x2xf32>,
    return
  }
  func.func @transform_0(%arg0: i32) -> (i32, i32) {
    %c0_i32 = arith.constant 0 : i32
    %c0_i32_0 = arith.constant 0 : i32
    return %arg0, %c0_i32 : i32, i32
  }
  func.func @transform_1(%arg0: i32) -> (i32, i32) {
    %c0_i32 = arith.constant 0 : i32
    %c0_i32_0 = arith.constant 0 : i32
    %c0_i32_1 = arith.constant 0 : i32
    return %c0_i32, %c0_i32_0 : i32, i32
  }
  func.func @transform_2(%arg0: i32) -> (i32, i32) {
    %c0_i32 = arith.constant 0 : i32
    %c0_i32_0 = arith.constant 0 : i32
    %c0_i32_1 = arith.constant 0 : i32
    return %c0_i32, %c0_i32_0 : i32, i32
  }
  func.func @transform_3(%arg0: i32) -> (i32, i32) {
    %c0_i32 = arith.constant 0 : i32
    %c0_i32_0 = arith.constant 0 : i32
    return %arg0, %c0_i32 : i32, i32
  }
}

</mosaic_0001>

<bundles_post_ra>
// kernel: tpu_custom_call.1
= control target key start
LH: loop header
LB: loop body
LE: loop exit
PB: predicated region body
PF: predicated region fallthrough
CT: control target
= control target key end

     0   :  { %8 = vsyncpa [#allocation3], 0  ;;  %s276_s0 = inlined_call_operand.hbm [shape: f32[2,32], index: 0, kind: input, shape index: {}]   ;;  %s277_s1 = inlined_call_operand.hbm [shape: f32[32,128], index: 1, kind: input, shape index: {}]   ;;  %s278_s2 = inlined_call_operand.vmem [shape: f32[1,2], index: 2, kind: input, shape index: {}]   ;;  %s279_s3 = inlined_call_operand.hbm [shape: f32[2,2], index: 3, kind: output, shape index: {}]  }
   0x1   :  { %9 = vsyncpa [#allocation6], 0 }
   0x2   :  { %10 = vsyncpa [#allocation4], 0  ;;  %s237_s12 = smov [#allocation2]   ;;  %s238_s14 = smov [#allocation5]  }
   0x3   :  { %s17_s13 = sshll.u32 %s237_s12, 4  ;;  %s26_s15 = sshll.u32 %s238_s14, 4  ;;  %s18_s13 = int_to_ptr.vmem [resolvable:$true] %s17_s13  ;;  %s27_s15 = int_to_ptr.vmem [resolvable:$true] %s26_s15 }
   0x4   :  { %s179_s16 = scalar_lea.vmem %s18_s13, 32  ;;  %p184_p1 = scmp.lt.s32.totalorder %s18_s13, %s18_s13 }
   0x5   :  { %p180_p0 = scmp.ne.s32.totalorder %s18_s13, %s179_s16  ;;  %p185_p2 = scmp.lt.s32.totalorder %s179_s16, %s179_s16 }
   0x7   :  { %p186_p3 = por %p185_p2, %p184_p1 }
   0x9   :  { %p187_p4 = pnand %p186_p3, %p180_p0 }
   0xb   :  { %190 = shalt.err (!%p187_p4)
}
   0xc   :  { %20 = dma.hbm_to_vmem [thread:$0]  %s276_s0, 32, %s18_s13, [#allocation3]  }
   0xd   :  { %s199_s19 = scalar_lea.vmem %s27_s15, 512  ;;  %p204_p6 = scmp.lt.s32.totalorder %s27_s15, %s27_s15 }
   0xe   :  { %p200_p5 = scmp.ne.s32.totalorder %s27_s15, %s199_s19  ;;  %p205_p7 = scmp.lt.s32.totalorder %s199_s19, %s199_s19 }
  0x10   :  { %p206_p8 = por %p205_p7, %p204_p6 }
  0x12   :  { %p207_p9 = pnand %p206_p8, %p200_p5 }
  0x14   :  { %210 = shalt.err (!%p207_p9)
}
  0x15   :  { %s239_s20 = smov 128   ;;  %s240_s21 = smov 8  }
  0x16   :  { %32 = dma.hbm_to_vmem [thread:$0]  %s277_s1, 512, %s27_s15, [#allocation6], %s239_s20, %s239_s20, %s240_s21  }
  0x17   :  { %231 = dma.done.wait [#allocation3], 32  }
  0x18   :  { %232 = vsyncadd [#allocation3], 4294967264 }
  0x19   :  { %233 = dma.done.wait [#allocation6], 512  }
  0x1a   :  { %234 = vsyncadd [#allocation6], 4294966784  ;;  %v241_v0 = vmov 0.0   ;;  %vm242_vm0 = vmmov 0   ;;  %v45_v1 = vld [vmem:[#allocation5 + $0x18] sm:$0xff]  ;;  %v44_v2 = vld [vmem:[#allocation5 + $0x10] sm:$0xff] }
  0x1b   :  { %153 = vmatprep.subr.mxu0 %v241_v0  ;;  %161 = vmatprep.mubr.msk.f32.mxu0 %vm242_vm0, %v241_v0  ;;  %v43_v3 = vld [vmem:[#allocation5 + $0x8] sm:$0xff]  ;;  %v42_v4 = vld [vmem:[#allocation5] sm:$0xff]  ;;  %v41_v5 = vld [vmem:[#allocation2] sm:$0x3]  ;;  %vm46_vm1 = vcmask 261120   ;;  %s243_s24 = smov [#allocation7]  }
  0x1c   :  { %154 = vmatpush3.msra.mxu0 %v45_v1  ;;  %v147_v6 = vld [vmem:[%s278_s2] ss:$0 sm:$0xff]  ;;  %s136_s25 = sshll.u32 %s243_s24, 4  ;;  %vm128_vm2 = vcmask 9216   ;;  %s137_s25 = int_to_ptr.vmem [resolvable:$true] %s136_s25 }
  0x1d   :  { %155 = vmatprep.subr.mxu0 %v241_v0  ;;  %s211_s26 = scalar_lea.vmem %s137_s25, 32  ;;  %p216_p11 = scmp.lt.s32.totalorder %s137_s25, %s137_s25 }
  0x1e   :  { %156 = vmatpush3.msra.mxu0 %v44_v2  ;;  %p212_p10 = scmp.ne.s32.totalorder %s137_s25, %s211_s26  ;;  %p217_p12 = scmp.lt.s32.totalorder %s211_s26, %s211_s26 }
  0x1f   :  { %157 = vmatprep.subr.mxu0 %v241_v0 }
  0x20   :  { %158 = vmatpush3.msra.mxu0 %v43_v3  ;;  %p218_p13 = por %p217_p12, %p216_p11 }
  0x21   :  { %159 = vmatprep.subr.mxu0 %v241_v0 }
  0x22   :  { %160 = vmatpush3.msra.mxu0 %v42_v4  ;;  %p219_p0 = pnand %p218_p13, %p212_p10 }
  0x23   :  { %162 = vmatmul.mubr.msk.f32.vlgmr.msra.gmra.mxu0 %vm46_vm1, %v41_v5 }
  0xe3   :  { %v116_v7 = vpop.f32.mrf.mxu0 }
  0xe4   :  { %v127_v8 = vadd.f32 %v147_v6, %v116_v7 }
  0xe5   :  { %v163_v9 = vpop.f32.mrf.mxu0 }
  0xe6   :  { %129 = vst.msk [vmem:[#allocation7] sm:$0x3] %vm128_vm2, %v127_v8 }
  0xe7   :  { %222 = shalt.err (!%p219_p0)
}
  0xe8   :  { %139 = dma.vmem_to_hbm [thread:$0]  %s137_s25, 32, %s279_s3, [#allocation4]  }
  0xe9   :  { %235 = dma.done.wait [#allocation4], 32  }
  0xea   :  { %236 = vsyncadd [#allocation4], 4294967264 }
  0xeb   :  { %143 = vsyncpa [#allocation3], 1 }
  0xec   :  { %144 = vsyncpa [#allocation6], 1 }
  0xed   :  { %145 = vsyncpa [#allocation4], 1 }

</bundles_post_ra>
